<compile_context>
chip_gen: v7x
topology: tpu7x:2x2x1
jax: 0.10.0
libtpu: 0.0.40
codegen_flags: <defaults>
</compile_context>

<pallas_src>
import functools
import math

import jax
import jax.numpy as jnp
from jax.experimental import pallas as pl
from jax.experimental.pallas import tpu as pltpu


# ----------------------------------------------------------------------------
# Fused kernel: QKV projections + scaled dot-product attention (one batch elem)
# ----------------------------------------------------------------------------

def _attention_head_kernel(q_ref, k_ref, v_ref,
                           wq_ref, bq_ref, wk_ref, bk_ref, wv_ref, bv_ref,
                           o_ref, *, scale, matmul_dtype):
    """Refs (batch dim squeezed away by BlockSpec):
         q_ref: (Sq, Din)   k_ref/v_ref: (Sk, Din)
         wq: (Din, Dq)  wk/wv: (Din, Dk)  biases: (1, D*)
         o_ref: (Sq, Dk)
    """
    qx = q_ref[...].astype(matmul_dtype)
    kx = k_ref[...].astype(matmul_dtype)
    vx = v_ref[...].astype(matmul_dtype)

    # Linear projections (f32 accumulation on the MXU).
    q = jnp.dot(qx, wq_ref[...].astype(matmul_dtype),
                preferred_element_type=jnp.float32) + bq_ref[...]
    k = jnp.dot(kx, wk_ref[...].astype(matmul_dtype),
                preferred_element_type=jnp.float32) + bk_ref[...]
    v = jnp.dot(vx, wv_ref[...].astype(matmul_dtype),
                preferred_element_type=jnp.float32) + bv_ref[...]

    # Fold 1/sqrt(dim_q) into Q once instead of scaling the (Sq, Sk) scores.
    q = q * scale

    # Scores + numerically stable softmax (math identical to torch.softmax).
    s = jnp.dot(q.astype(matmul_dtype), k.astype(matmul_dtype).T,
                preferred_element_type=jnp.float32)                 # (Sq, Sk)
    s = s - jnp.max(s, axis=-1, keepdims=True)
    p = jnp.exp(s)
    # Reciprocal on the (otherwise idle) EUP slot instead of a VALU divide.
    p = p * pl.reciprocal(jnp.sum(p, axis=-1, keepdims=True), approx=True)

    ctx = jnp.dot(p.astype(matmul_dtype), v.astype(matmul_dtype),
                  preferred_element_type=jnp.float32)                # (Sq, Dk)
    o_ref[...] = ctx.astype(o_ref.dtype)


# ----------------------------------------------------------------------------
# Wrapper
# ----------------------------------------------------------------------------

def attention_head_forward(query, key, value, params, *,
                           matmul_dtype=jnp.float32):
    """query: (B, Sq, Din), key/value: (B, Sk, Din) -> (B, Sq, Dk)."""
    B, Sq, Din = query.shape
    _, Sk, _ = key.shape
    Dq = params["wq"].shape[1]
    Dk = params["wk"].shape[1]
    scale = 1.0 / math.sqrt(Dq)   # torch: scores / query.size(-1) ** 0.5

    kern = functools.partial(_attention_head_kernel,
                             scale=scale, matmul_dtype=matmul_dtype)

    # Batch is the grid axis; weights use constant index maps so they are
    # fetched once and remain VMEM-resident across grid steps.
    act_spec = lambda s, sk: pl.BlockSpec((None, s, Din), lambda b: (b, 0, 0))
    const2d = lambda shp: pl.BlockSpec(shp, lambda b: (0, 0))

    return pl.pallas_call(
        kern,
        out_shape=jax.ShapeDtypeStruct((B, Sq, Dk), query.dtype),
        grid=(B,),
        in_specs=[
            pl.BlockSpec((None, Sq, Din), lambda b: (b, 0, 0)),   # query
            pl.BlockSpec((None, Sk, Din), lambda b: (b, 0, 0)),   # key
            pl.BlockSpec((None, Sk, Din), lambda b: (b, 0, 0)),   # value
            const2d((Din, Dq)), const2d((1, Dq)),                 # wq, bq
            const2d((Din, Dk)), const2d((1, Dk)),                 # wk, bk
            const2d((Din, Dk)), const2d((1, Dk)),                 # wv, bv
        ],
        out_specs=pl.BlockSpec((None, Sq, Dk), lambda b: (b, 0, 0)),
        compiler_params=pltpu.CompilerParams(
            # "parallel" lets v7x shard the batch across its 2 TensorCores;
            # harmless (single TC) on v5e / v6e.
            dimension_semantics=("parallel",)),
    )(query, key, value,
      params["wq"], params["bq"],
      params["wk"], params["bk"],
      params["wv"], params["bv"])


# ----------------------------------------------------------------------------
# Parameters (PyTorch nn.Linear default init), module-style wrapper, reference
# ----------------------------------------------------------------------------

def _init_linear(key, fan_in, fan_out):
    bound = 1.0 / math.sqrt(fan_in)
    kw, kb = jax.random.split(key)
    w = jax.random.uniform(kw, (fan_in, fan_out), jnp.float32, -bound, bound)
    b = jax.random.uniform(kb, (1, fan_out), jnp.float32, -bound, bound)
    return w, b


class AttentionHead:
    def __init__(self, dim_in, dim_q, dim_k, key):
        kq, kk, kv = jax.random.split(key, 3)
        wq, bq = _init_linear(kq, dim_in, dim_q)
        wk, bk = _init_linear(kk, dim_in, dim_k)
        wv, bv = _init_linear(kv, dim_in, dim_k)
        self.params = dict(wq=wq, bq=bq, wk=wk, bk=bk, wv=wv, bv=bv)

    def __call__(self, query, key, value, *, matmul_dtype=jnp.float32):
        # For large shapes on v6e / v7x pass matmul_dtype=jnp.bfloat16 to use
        # the bf16-native MXU (f32 accumulation is kept either way).
        return attention_head_forward(query, key, value, self.params,
                                      matmul_dtype=matmul_dtype)


def attention_head_reference(query, key, value, params):
    """Pure-JAX reference mirroring the PyTorch forward."""
    q = query @ params["wq"] + params["bq"]
    k = key @ params["wk"] + params["bk"]
    v = value @ params["wv"] + params["bv"]
    s = jnp.einsum("bqd,bkd->bqk", q, k) / math.sqrt(q.shape[-1])
    p = jax.nn.softmax(s, axis=-1)
    return jnp.einsum("bqk,bkd->bqd", p, v)


# ----------------------------------------------------------------------------
# Demo
# ----------------------------------------------------------------------------

if __name__ == "__main__":
    batch, seq_q, seq_k = 2, 8, 8
    dim_in, dim_q, dim_k = 32, 16, 16   # dim_q == dim_k (required by q @ k^T)

    root = jax.random.PRNGKey(0)
    k_params, k_q, k_k, k_v = jax.random.split(root, 4)

    head = AttentionHead(dim_in, dim_q, dim_k, key=k_params)

    query = jax.random.normal(k_q, (batch, seq_q, dim_in), jnp.float32)
    key = jax.random.normal(k_k, (batch, seq_k, dim_in), jnp.float32)
    value = jax.random.normal(k_v, (batch, seq_k, dim_in), jnp.float32)

    out = head(query, key, value)
    out = jax.block_until_ready(out)
    assert out.shape == (batch, seq_q, dim_k)

    ref = attention_head_reference(query, key, value, head.params)
    assert jnp.allclose(out, ref, atol=1e-2, rtol=1e-2), "mismatch vs reference"

    print("KERNEL_OK")
</pallas_src>

<mosaic_0001>
module attributes {stable_mosaic.version = 11 : i64} {
  func.func @_attention_head_kernel(%arg0: i32, %arg1: memref<1x8x32xf32, #tpu.memory_space<vmem>>, %arg2: memref<1x8x32xf32, #tpu.memory_space<vmem>>, %arg3: memref<1x8x32xf32, #tpu.memory_space<vmem>>, %arg4: memref<32x16xf32, #tpu.memory_space<vmem>>, %arg5: memref<1x16xf32, #tpu.memory_space<vmem>>, %arg6: memref<32x16xf32, #tpu.memory_space<vmem>>, %arg7: memref<1x16xf32, #tpu.memory_space<vmem>>, %arg8: memref<32x16xf32, #tpu.memory_space<vmem>>, %arg9: memref<1x16xf32, #tpu.memory_space<vmem>>, %arg10: memref<1x8x16xf32, #tpu.memory_space<vmem>>) attributes {dimension_semantics = [#tpu.dimension_semantics<parallel>], iteration_bounds = array<i64: 2>, scalar_prefetch = 0 : i64, scratch_operands = 0 : i64, tpu.core_type = #tpu.core_type<tc>, window_params = [{transform_indices = @transform_0, window_bounds = array<i64: 1, 8, 32>}, {transform_indices = @transform_1, window_bounds = array<i64: 1, 8, 32>}, {transform_indices = @transform_2, window_bounds = array<i64: 1, 8, 32>}, {pipeline_mode = #tpu.pipeline_mode<synchronous>, transform_indices = @transform_3, window_bounds = array<i64: 32, 16>}, {pipeline_mode = #tpu.pipeline_mode<synchronous>, transform_indices = @transform_4, window_bounds = array<i64: 1, 16>}, {pipeline_mode = #tpu.pipeline_mode<synchronous>, transform_indices = @transform_5, window_bounds = array<i64: 32, 16>}, {pipeline_mode = #tpu.pipeline_mode<synchronous>, transform_indices = @transform_6, window_bounds = array<i64: 1, 16>}, {pipeline_mode = #tpu.pipeline_mode<synchronous>, transform_indices = @transform_7, window_bounds = array<i64: 32, 16>}, {pipeline_mode = #tpu.pipeline_mode<synchronous>, transform_indices = @transform_8, window_bounds = array<i64: 1, 16>}, {transform_indices = @transform_9, window_bounds = array<i64: 1, 8, 16>}]} {
    %c0 = arith.constant 0 : index
    %c0_0 = arith.constant 0 : index
    %c0_1 = arith.constant 0 : index
    %0 = vector.load %arg1[%c0, %c0_0, %c0_1] : memref<1x8x32xf32, #tpu.memory_space<vmem>>, vector<1x8x32xf32>
    %1 = vector.shape_cast %0 : vector<1x8x32xf32> to vector<8x32xf32>
    %c0_2 = arith.constant 0 : index
    %c0_3 = arith.constant 0 : index
    %c0_4 = arith.constant 0 : index
    %2 = vector.load %arg2[%c0_2, %c0_3, %c0_4] : memref<1x8x32xf32, #tpu.memory_space<vmem>>, vector<1x8x32xf32>
    %3 = vector.shape_cast %2 : vector<1x8x32xf32> to vector<8x32xf32>
    %c0_5 = arith.constant 0 : index
    %c0_6 = arith.constant 0 : index
    %c0_7 = arith.constant 0 : index
    %4 = vector.load %arg3[%c0_5, %c0_6, %c0_7] : memref<1x8x32xf32, #tpu.memory_space<vmem>>, vector<1x8x32xf32>
    %5 = vector.shape_cast %4 : vector<1x8x32xf32> to vector<8x32xf32>
    %c0_8 = arith.constant 0 : index
    %c0_9 = arith.constant 0 : index
    %6 = vector.load %arg4[%c0_8, %c0_9] : memref<32x16xf32, #tpu.memory_space<vmem>>, vector<32x16xf32>
    %cst = arith.constant dense<0.000000e+00> : vector<8x16xf32>
    %7 = tpu.matmul %1, %6, %cst {dimension_numbers = #tpu.dot_dimension_numbers<[1], [0], [0], [1], [0, 0, 1, 1], [], []>} : vector<8x32xf32>, vector<32x16xf32>, vector<8x16xf32> -> vector<8x16xf32>
    %c0_10 = arith.constant 0 : index
    %c0_11 = arith.constant 0 : index
    %8 = vector.load %arg5[%c0_10, %c0_11] : memref<1x16xf32, #tpu.memory_space<vmem>>, vector<1x16xf32>
    %9 = vector.broadcast %8 : vector<1x16xf32> to vector<8x16xf32>
    %10 = arith.addf %7, %9 : vector<8x16xf32>
    %c0_12 = arith.constant 0 : index
    %c0_13 = arith.constant 0 : index
    %11 = vector.load %arg6[%c0_12, %c0_13] : memref<32x16xf32, #tpu.memory_space<vmem>>, vector<32x16xf32>
    %cst_14 = arith.constant dense<0.000000e+00> : vector<8x16xf32>
    %12 = tpu.matmul %3, %11, %cst_14 {dimension_numbers = #tpu.dot_dimension_numbers<[1], [0], [0], [1], [0, 0, 1, 1], [], []>} : vector<8x32xf32>, vector<32x16xf32>, vector<8x16xf32> -> vector<8x16xf32>
    %c0_15 = arith.constant 0 : index
    %c0_16 = arith.constant 0 : index
    %13 = vector.load %arg7[%c0_15, %c0_16] : memref<1x16xf32, #tpu.memory_space<vmem>>, vector<1x16xf32>
    %14 = vector.broadcast %13 : vector<1x16xf32> to vector<8x16xf32>
    %15 = arith.addf %12, %14 : vector<8x16xf32>
    %c0_17 = arith.constant 0 : index
    %c0_18 = arith.constant 0 : index
    %16 = vector.load %arg8[%c0_17, %c0_18] : memref<32x16xf32, #tpu.memory_space<vmem>>, vector<32x16xf32>
    %cst_19 = arith.constant dense<0.000000e+00> : vector<8x16xf32>
    %17 = tpu.matmul %5, %16, %cst_19 {dimension_numbers = #tpu.dot_dimension_numbers<[1], [0], [0], [1], [0, 0, 1, 1], [], []>} : vector<8x32xf32>, vector<32x16xf32>, vector<8x16xf32> -> vector<8x16xf32>
    %c0_20 = arith.constant 0 : index
    %c0_21 = arith.constant 0 : index
    %18 = vector.load %arg9[%c0_20, %c0_21] : memref<1x16xf32, #tpu.memory_space<vmem>>, vector<1x16xf32>
    %19 = vector.broadcast %18 : vector<1x16xf32> to vector<8x16xf32>
    %20 = arith.addf %17, %19 : vector<8x16xf32>
    %cst_22 = arith.constant 2.500000e-01 : f32
    %21 = vector.broadcast %cst_22 : f32 to vector<8x16xf32>
    %22 = arith.mulf %10, %21 : vector<8x16xf32>
    %23 = tpu.transpose %15, [1, 0] : vector<8x16xf32> -> vector<16x8xf32>
    %cst_23 = arith.constant dense<0.000000e+00> : vector<8x8xf32>
    %24 = tpu.matmul %22, %23, %cst_23 {dimension_numbers = #tpu.dot_dimension_numbers<[1], [0], [0], [1], [0, 0, 1, 1], [], []>} : vector<8x16xf32>, vector<16x8xf32>, vector<8x8xf32> -> vector<8x8xf32>
    %cst_24 = arith.constant dense<0xFF800000> : vector<8xf32>
    %25 = vector.multi_reduction <maximumf>, %24, %cst_24 [1] : vector<8x8xf32> to vector<8xf32>
    %26 = vector.shape_cast %25 : vector<8xf32> to vector<8x1xf32>
    %27 = vector.broadcast %26 : vector<8x1xf32> to vector<8x8xf32>
    %28 = arith.subf %24, %27 : vector<8x8xf32>
    %29 = math.exp %28 : vector<8x8xf32>
    %cst_25 = arith.constant dense<0.000000e+00> : vector<8xf32>
    %30 = vector.multi_reduction <add>, %29, %cst_25 [1] : vector<8x8xf32> to vector<8xf32>
    %31 = vector.shape_cast %30 : vector<8xf32> to vector<8x1xf32>
    %32 = tpu.reciprocal %31 {approx = true} : vector<8x1xf32> -> vector<8x1xf32>
    %33 = vector.broadcast %32 : vector<8x1xf32> to vector<8x8xf32>
    %34 = arith.mulf %29, %33 : vector<8x8xf32>
    %cst_26 = arith.constant dense<0.000000e+00> : vector<8x16xf32>
    %35 = tpu.matmul %34, %20, %cst_26 {dimension_numbers = #tpu.dot_dimension_numbers<[1], [0], [0], [1], [0, 0, 1, 1], [], []>} : vector<8x8xf32>, vector<8x16xf32>, vector<8x16xf32> -> vector<8x16xf32>
    %c0_27 = arith.constant 0 : index
    %c0_28 = arith.constant 0 : index
    %c0_29 = arith.constant 0 : index
    %36 = vector.load %arg10[%c0_27, %c0_28, %c0_29] : memref<1x8x16xf32, #tpu.memory_space<vmem>>, vector<1x8x16xf32>
    %37 = vector.shape_cast %36 : vector<1x8x16xf32> to vector<8x16xf32>
    %38 = vector.shape_cast %35 : vector<8x16xf32> to vector<1x8x16xf32>
    tpu.vector_store %arg10[%c0_27, %c0_28, %c0_29], %38 {strides = array<i32>} : memref<1x8x16xf32, #tpu.memory_space<vmem>>, vector<1x8x16xf32>,
    return
  }
  func.func @transform_0(%arg0: i32) -> (i32, i32, i32) {
    %c0_i32 = arith.constant 0 : i32
    %c0_i32_0 = arith.constant 0 : i32
    %c0_i32_1 = arith.constant 0 : i32
    return %arg0, %c0_i32, %c0_i32_0 : i32, i32, i32
  }
  func.func @transform_1(%arg0: i32) -> (i32, i32, i32) {
    %c0_i32 = arith.constant 0 : i32
    %c0_i32_0 = arith.constant 0 : i32
    %c0_i32_1 = arith.constant 0 : i32
    return %arg0, %c0_i32, %c0_i32_0 : i32, i32, i32
  }
  func.func @transform_2(%arg0: i32) -> (i32, i32, i32) {
    %c0_i32 = arith.constant 0 : i32
    %c0_i32_0 = arith.constant 0 : i32
    %c0_i32_1 = arith.constant 0 : i32
    return %arg0, %c0_i32, %c0_i32_0 : i32, i32, i32
  }
  func.func @transform_3(%arg0: i32) -> (i32, i32) {
    %c0_i32 = arith.constant 0 : i32
    %c0_i32_0 = arith.constant 0 : i32
    %c0_i32_1 = arith.constant 0 : i32
    return %c0_i32, %c0_i32_0 : i32, i32
  }
  func.func @transform_4(%arg0: i32) -> (i32, i32) {
    %c0_i32 = arith.constant 0 : i32
    %c0_i32_0 = arith.constant 0 : i32
    %c0_i32_1 = arith.constant 0 : i32
    return %c0_i32, %c0_i32_0 : i32, i32
  }
  func.func @transform_5(%arg0: i32) -> (i32, i32) {
    %c0_i32 = arith.constant 0 : i32
    %c0_i32_0 = arith.constant 0 : i32
    %c0_i32_1 = arith.constant 0 : i32
    return %c0_i32, %c0_i32_0 : i32, i32
  }
  func.func @transform_6(%arg0: i32) -> (i32, i32) {
    %c0_i32 = arith.constant 0 : i32
    %c0_i32_0 = arith.constant 0 : i32
    %c0_i32_1 = arith.constant 0 : i32
    return %c0_i32, %c0_i32_0 : i32, i32
  }
  func.func @transform_7(%arg0: i32) -> (i32, i32) {
    %c0_i32 = arith.constant 0 : i32
    %c0_i32_0 = arith.constant 0 : i32
    %c0_i32_1 = arith.constant 0 : i32
    return %c0_i32, %c0_i32_0 : i32, i32
  }
  func.func @transform_8(%arg0: i32) -> (i32, i32) {
    %c0_i32 = arith.constant 0 : i32
    %c0_i32_0 = arith.constant 0 : i32
    %c0_i32_1 = arith.constant 0 : i32
    return %c0_i32, %c0_i32_0 : i32, i32
  }
  func.func @transform_9(%arg0: i32) -> (i32, i32, i32) {
    %c0_i32 = arith.constant 0 : i32
    %c0_i32_0 = arith.constant 0 : i32
    %c0_i32_1 = arith.constant 0 : i32
    return %arg0, %c0_i32, %c0_i32_0 : i32, i32, i32
  }
}

</mosaic_0001>

<bundles_post_ra>
// kernel: tpu_custom_call.1
= control target key start
LH: loop header
LB: loop body
LE: loop exit
PB: predicated region body
PF: predicated region fallthrough
CT: control target
= control target key end

     0   :  { %14 = vsyncpa [#allocation3], 0  ;;  %s1314_s0 = inlined_call_operand.vmem [shape: f32[2,8,32], index: 0, kind: input, shape index: {}]   ;;  %s1315_s1 = inlined_call_operand.vmem [shape: f32[2,8,32], index: 1, kind: input, shape index: {}]   ;;  %s1316_s2 = inlined_call_operand.vmem [shape: f32[2,8,32], index: 2, kind: input, shape index: {}]   ;;  %s1317_s3 = inlined_call_operand.vmem [shape: f32[32,16], index: 3, kind: input, shape index: {}]   ;;  %s1318_s4 = inlined_call_operand.vmem [shape: f32[1,16], index: 4, kind: input, shape index: {}]   ;;  %s1319_s5 = inlined_call_operand.vmem [shape: f32[32,16], index: 5, kind: input, shape index: {}]   ;;  %s1320_s6 = inlined_call_operand.vmem [shape: f32[1,16], index: 6, kind: input, shape index: {}]   ;;  %s1321_s7 = inlined_call_operand.vmem [shape: f32[32,16], index: 7, kind: input, shape index: {}]   ;;  %s1322_s8 = inlined_call_operand.vmem [shape: f32[1,16], index: 8, kind: input, shape index: {}]   ;;  %s1323_s9 = inlined_call_operand.hbm [shape: f32[2,8,16], index: 9, kind: output, shape index: {}]  }
   0x1   :  { %16 = vsyncpa [#allocation3 + $0x1], 0  ;;  %s1144_s30 = smov 0   ;;  %s1146_s10 = smov 0  }
   0x2   :  { %s1148_s11 = smov 0   ;;  %s1150_s12 = smov 0  }
   0x3 LB: > { %s1165_s13 = sadd.s32 4294967295, %s1088_s12   ;;  %s879_s14 = sadd.s32 4294967294, %s1088_s12   ;;  %s1088_s12 = sphi %s1150_s12, %s1329_s12   ;;  %s1084_s11 = sphi %s1148_s11, %s1328_s11   ;;  %s1080_s10 = sphi %s1146_s10, %s1327_s10   ;;  %s1076_s30 = sphi %s1144_s30, %s1326_s30  }
   0x4   : > { %s1169_s15 = sadd.s32 1, %s1088_s12   ;;  %s233_s16 = sadd.s32 1, %s1084_s11 }
   0x5   : > { %s230_s17 = ssub.s32 %s1088_s12, %s1169_s15  ;;  %p243_p0 = scmp.ne.s32.totalorder %s1084_s11, %s1080_s10 }
   0x6   : > { %p231_p1 = scmp.eq.s32.totalorder %s230_s17, 0  ;;  %p244_p2 = scmp.eq.s32.totalorder %s1165_s13, 1 }
   0x7   : > { %p249_p3 = scmp.ne.s32.totalorder %s1080_s10, %s1076_s30  ;;  %p250_p4 = scmp.eq.s32.totalorder %s879_s14, 1 }
   0x8   : > { %s1180_s18 = scalar_select %p231_p1, %s1084_s11, %s233_s16  }
   0x9   : > { %p1182_p5 = por %p244_p2, %p243_p0  ;;  %p1186_p6 = por %p250_p4, %p249_p3 }
   0xa   : > { %p882_p7 = scmp.ge.s32.totalorder %s1088_s12, 1  ;;  %p307_p8 = scmp.lt.s32.totalorder %s1088_s12, 3 }
   0xc   : > { %p308_p9 = pnand %p882_p7, %p307_p8 }
   0xd   : > { %v450_v0 = vld [vmem:[%s1319_s5] sm:$0xff] (!%p308_p9)  ;;  %v451_v1 = vld [vmem:[%s1319_s5 + $0x8] sm:$0xff] (!%p308_p9)  ;;  %v1090_v3 = vmov (!%p308_p9), 0.0|0.0   ;;  %v452_v6 = vld [vmem:[%s1319_s5 + $0x10] sm:$0xff] (!%p308_p9)  ;;  %p350_p10 = scmp.lt.s32.totalorder (!%p308_p9), %s1165_s13, 1  ;;  %vm1091_vm0 = vmmov (!%p308_p9), 0  }
   0xe   : > { %311 = sbr.rel (%p308_p9) target bundleno = 995 (0x3e3), region = 56  ;;  %v365_v2 = vld [vmem:[%s1317_s3] sm:$0xff] (!%p308_p9)  ;;  %968 = vmatprep.subr.bf16.mxu1 (!%p308_p9), %v1090_v3  ;;  %962 = vmatprep.subr.bf16.mxu0 (!%p308_p9), %v1090_v3  ;;  %v969_v4 = vpack.c.bf16 (!%p308_p9), %v451_v1, %v450_v0  ;;  %v366_v5 = vld [vmem:[%s1317_s3 + $0x8] sm:$0xff] (!%p308_p9)  ;;  %v453_v7 = vld [vmem:[%s1319_s5 + $0x18] sm:$0xff] (!%p308_p9)  ;;  %v1092_v11 = vmov (!%p308_p9), 0.0   ;;  %vm376_vm1 = vcmask (!%p308_p9), 261120  }
   0xf   : > { %v963_v8 = vpack.c.bf16 (!%p308_p9), %v366_v5, %v365_v2  ;;  %v367_v9 = vld [vmem:[%s1317_s3 + $0x10] sm:$0xff] (!%p308_p9)  ;;  %v368_v10 = vld [vmem:[%s1317_s3 + $0x18] sm:$0xff] (!%p308_p9)  ;;  %938 = vmatprep.mubr.msk.f32.mxu1 (!%p308_p9), %vm1091_vm0, %v1092_v11  ;;  %927 = vmatprep.mubr.msk.f32.mxu0 (!%p308_p9), %vm1091_vm0, %v1092_v11  ;;  %v972_v12 = vpack.c.bf16 (!%p308_p9), %v453_v7, %v452_v6  ;;  %v889_v16 = vld [vmem:[%s1320_s6] ss:$0 sm:$0xff] (!%p308_p9)  ;;  %vm619_vm2 = vcmask (!%p308_p9), 130048   ;;  %vm696_vm3 = vcmask (!%p308_p9), 64512  }
  0x10   : > { %970 = vmatpush3.bf16.msra.mxu1 (!%p308_p9), %v969_v4  ;;  %v966_v13 = vpack.c.bf16 (!%p308_p9), %v368_v10, %v367_v9  ;;  %v887_v17 = vld [vmem:[%s1318_s4] ss:$0 sm:$0xff] (!%p308_p9)  ;;  %v535_v26 = vld [vmem:[%s1321_s7 + $0x8] sm:$0xff] (!%p308_p9)  ;;  %v536_v27 = vld [vmem:[%s1321_s7 + $0x10] sm:$0xff] (!%p308_p9)  ;;  %s347_s27 = sand.u32 (!%p308_p9), 1, %s1080_s10  }
  0x11   : > { %964 = vmatpush3.bf16.msra.mxu0 (!%p308_p9), %v963_v8  ;;  %971 = vmatprep.subr.bf16.mxu1 (!%p308_p9), %v1090_v3  ;;  %v534_v25 = vld [vmem:[%s1321_s7] sm:$0xff] (!%p308_p9)  ;;  %v537_v29 = vld [vmem:[%s1321_s7 + $0x18] sm:$0xff] (!%p308_p9)  ;;  %s883_s28 = sshll.u32 (!%p308_p9), %s347_s27, 3  ;;  %s783_s23 = scalar_lea.sflag (!%p308_p9), [#allocation3], %s347_s27 }
  0x12   : > { %965 = vmatprep.subr.bf16.mxu0 (!%p308_p9), %v1090_v3  ;;  %v975_v28 = vpack.c.bf16 (!%p308_p9), %v535_v26, %v534_v25  ;;  %v978_v30 = vpack.c.bf16 (!%p308_p9), %v537_v29, %v536_v27  ;;  %v891_v41 = vld [vmem:[%s1322_s8] ss:$0 sm:$0xff] (!%p308_p9)  ;;  %s349_s14 = scalar_lea.vmem (!%p308_p9), [#allocation2], %s883_s28 }
  0x13   : > { %s796_s16 = sshll.u32 (!%p308_p9), %s349_s14, 4  ;;  %s1273_s16 = int_to_ptr.vmem [resolvable:$true] %s796_s16 }
  0x14   : > { %973 = vmatpush3.bf16.msra.mxu1 (!%p308_p9), %v972_v12 }
  0x15   : > { %s351_s25 = scalar_select %p350_p10, %s1165_s13, 1  ;;  %967 = vmatpush3.bf16.msra.mxu0 %v966_v13  ;;  %952 = vmatprep.subr.mxu1 %v1092_v11 }
  0x16   : > { %974 = vmatprep.subr.bf16.mxu0 %v1090_v3 }
  0x17   : > { %s1220_s26 = sshll.u32 %s351_s25, 3 }
  0x18   : > { %s357_s29 = scalar_lea.vmem %s1315_s1, %s1220_s26  ;;  %s353_s17 = scalar_lea.vmem %s1314_s0, %s1220_s26 }
  0x19   : > { %v363_v14 = vld [vmem:[%s357_s29] sm:$0xff]  ;;  %s361_s24 = scalar_lea.vmem %s1316_s2, %s1220_s26  ;;  %s897_s29 = sshll.u32 %s1165_s13, 7 }
  0x1a   : > { %v362_v15 = vld [vmem:[%s353_s17] sm:$0xff]  ;;  %939 = vmatmul.mubr.msk.f32.vlgmr.msra.gmra.mrb[0].mxu1 %vm376_vm1, %v363_v14  ;;  %s1271_s22 = scalar_lea.hbm %s1323_s9, %s897_s29  ;;  %s1093_s13 = smov [#allocation2]  }
  0x1b   : > { %928 = vmatmul.mubr.msk.f32.vlgmr.msra.gmra.mrb[0].mxu0 %vm376_vm1, %v362_v15  ;;  %954 = vmatprep.mubr.msk.f32.mxu1 %vm1091_vm0, %v1092_v11  ;;  %v364_v31 = vld [vmem:[%s361_s24] sm:$0xff]  ;;  %s1026_s24 = scalar_lea.vmem %s1273_s16, 128  ;;  %s1030_s26 = sshll.u32 %s1093_s13, 4  ;;  %s1031_s26 = int_to_ptr.vmem [resolvable:$false] %s1030_s26 }
  0x1c   : > { %949 = vmatprep.mubr.msk.f32.mxu0 %vm1091_vm0, %v1092_v11  ;;  %976 = vmatpush3.bf16.msra.mxu0 %v975_v28  ;;  %p1027_p11 = scmp.ne.s32.totalorder %s1273_s16, %s1026_s24  ;;  %s1032_s25 = scalar_lea.vmem %s1031_s26, 256 }
  0x1d   : > { %977 = vmatprep.subr.bf16.mxu0 %v1090_v3  ;;  %p1033_p0 = scmp.lt.s32.totalorder %s1273_s16, %s1031_s26  ;;  %p1034_p1 = scmp.lt.s32.totalorder %s1032_s25, %s1026_s24 }
  0x1e   : > { %p1028_p12 = pnand %p1027_p11, %p1182_p5 }
  0x1f   : > { %p1035_p2 = por %p1034_p1, %p1033_p0 }
  0x20   : > { %979 = vmatpush3.bf16.msra.mxu0 %v978_v30  ;;  %p1029_p13 = pneg %p1028_p12 }
  0x22   : > { %p1036_p3 = pnand %p1035_p2, %p1029_p13 }
  0x23   : > { %950 = vmatmul.mubr.msk.f32.vlgmr.msra.gmra.mrb[2].mxu0 %vm376_vm1, %v364_v31 }
  0xed   : > { %v530_v18 = vpop.f32.mrb[0].mxu1 }
  0xee   : > { %v531_v19 = vadd.f32 %v889_v16, %v530_v18  ;;  %v446_v20 = vpop.f32.mrb[0].mxu0  ;;  %v940_v21 = vpop.f32.mrb[1].mxu1 }
  0xef   : > { %v447_v22 = vadd.f32 %v887_v17, %v446_v20  ;;  %v929_v23 = vpop.f32.mrb[1].mxu0 }
  0xf0   : > { %953 = vmatpush3.xpose.msk.msra.mxu1 %vm619_vm2, %v531_v19 }
  0xf1   : > { %v618_v24 = vmul.f32 0.25, %v447_v22  ;;  %957 = vmatprep.subr.mxu1 %v1092_v11 }
  0xf3   : > { %955 = vmatmul.mubr.msk.f32.vlgmr.msra.gmra.mrb[2].mxu1 %vm619_vm2, %v618_v24 }
  0xf4   : > { %959 = vmatprep.mubr.msk.f32.mxu1 %vm1091_vm0, %v1092_v11 }
  0xf6   : > { %v614_v40 = vpop.f32.mrb[2].mxu0 }
  0xf7   : > { %v951_v42 = vpop.f32.mrb[3].mxu0  ;;  %v615_v43 = vadd.f32 %v891_v41, %v614_v40 }
  0xf9   : > { %958 = vmatpush3.msra.mxu1 %v615_v43 }
 0x1c6   : > { %v692_v32 = vpop.f32.mrb[2].mxu1 }
 0x1c7   : > { %v956_v33 = vpop.f32.mrb[3].mxu1  ;;  %v697_v34 = vsel %vm696_vm3, %v692_v32, -inf }
 0x1c8   : > { %698 = vmax.xlane.f32.xlu0 %v697_v34 }
 0x255   : > { %v699_v35 = vpop.xlane.xlu0 %698 }
 0x256   : > { %v700_v36 = vsub.f32 %v692_v32, %v699_v35 }
 0x258   : > { %v701_v37 = vmul.f32 1.442695, %v700_v36 }
 0x25a   : > { %1022 = vpow2.f32 %v701_v37 }
 0x264   : > { %v1023_v38 = vpop.eup %1022 }
 0x265   : > { %v703_v39 = vsel %vm696_vm3, %v1023_v38, 0.0 }
 0x266   : > { %704 = vadd.xlane.f32.xlu0 %v703_v39 }
 0x2f3   : > { %v705_v44 = vpop.xlane.xlu0 %704 }
 0x2f4   : > { %1024 = vrcp.f32 %v705_v44 }
 0x2fe   : > { %v1025_v45 = vpop.eup %1024 }
 0x2ff   : > { %v707_v46 = vmul.f32 %v1025_v45, %v1023_v38 }
 0x301   : > { %960 = vmatmul.mubr.msk.f32.vlgmr.msra.gmra.mrb[4].mxu1 %vm696_vm3, %v707_v46 }
 0x3d4   : > { %v777_v47 = vpop.f32.mrb[4].mxu1 }
 0x3d5   : > { %781 = vst.msk [vmem:[%s349_s14] sm:$0xff] %vm619_vm2, %v777_v47  ;;  %v961_v48 = vpop.f32.mrb[5].mxu1 }
 0x3d6   : > { %1039 = shalt.err (!%p1036_p3)
}
 0x3d7   : > { %s1040_s27 = scalar_lea.hbm %s1271_s22, 128  ;;  %s1044_s14 = scalar_lea.hbm %s1323_s9, 256 }
 0x3d8   : > { %p1041_p4 = scmp.ne.s32.totalorder %s1271_s22, %s1040_s27  ;;  %p1045_p9 = scmp.lt.u32.totalorder %s1271_s22, %s1323_s9 }
 0x3d9   : > { %p1046_p10 = scmp.lt.u32.totalorder %s1044_s14, %s1040_s27  ;;  %p1048_p12 = scmp.lt.u32.totalorder %s1040_s27, %s1271_s22 }
 0x3da   : > { %p1042_p7 = pnand %p1041_p4, %p1182_p5 }
 0x3db   : > { %p1047_p11 = por %p1046_p10, %p1045_p9 }
 0x3dc   : > { %p1043_p8 = pneg %p1042_p7 }
 0x3dd   : > { %p1049_p13 = por %p1048_p12, %p1047_p11 }
 0x3df   : > { %p1050_p0 = pnand %p1049_p13, %p1043_p8 }
 0x3e1   : > { %1053 = shalt.err (!%p1050_p0)
}
 0x3e2   : > { %980 = dma.vmem_to_hbm [thread:$0]  (%p1182_p5), %s1273_s16, 128, %s1271_s22, %s783_s23  }
 0x3e3 PF: > { %p986_p1 = scmp.ge.s32.totalorder %s1088_s12, 2  ;;  %s808_s24 = sand.u32 1, %s1076_s30  }
 0x3e4   : > { %s809_s13 = scalar_lea.sflag [#allocation3], %s808_s24 }
 0x3e5   : > { %p983_p2 = pnand %p986_p1, %p1186_p6 }
 0x3e7   : > { %1071 = dma.done.wait (!%p983_p2), %s809_s13, 128  }
 0x3e8   : > { %1073 = vsyncadd (!%p983_p2), %s809_s13, 4294967168  ;;  %p19_p3 = scmp.ge.s32.totalorder %s1169_s15, 4   ;;  %s1326_s30 = smov %s1080_s10 }
 0x3e9   : > { %s1327_s10 = smov %s1084_s11  ;;  %s1328_s11 = smov %s1180_s18 }
 0x3ea   : > { %s1329_s12 = smov %s1169_s15  ;;  %21 = sbr.rel (!%p19_p3) target bundleno = 3 (0x3), region = 97 }
 0x3f1   :  { %814 = vsyncpa [#allocation3], 1 }
 0x3f2   :  { %816 = vsyncpa [#allocation3 + $0x1], 1 }

</bundles_post_ra>
